<compile_context>
chip_gen: v6e
topology: v6e:2x2x1
jax: 0.10.0
libtpu: 0.0.40
codegen_flags: <defaults>
</compile_context>

<pallas_src>
import jax
import jax.numpy as jnp
from jax.experimental import pallas as pl
from jax.experimental.pallas import tpu as pltpu


def _fbn_kernel(x_ref, p_ref, o_ref):
    # p_ref: (TM, 2) f32 block; column 0 = scale, column 1 = fused bias.
    x = x_ref[...].astype(jnp.float32)
    p = p_ref[...]
    scale = p[:, 0:1]            # (TM, 1), broadcast over lanes
    fbias = p[:, 1:2]            # (TM, 1)
    o_ref[...] = (x * scale + fbias).astype(o_ref.dtype)


def _round_up(a, b):
    return (a + b - 1) // b * b


def frozen_batch_norm_2d(x, weight, bias, running_mean, running_var,
                         *, eps=1e-05, target_block_bytes=8 << 20):
    """x: (N, C, H, W); weight/bias/running_mean/running_var: (C,)."""
    N, C, H, W = x.shape
    NC, HW = N * C, H * W

    # ---- O(C) precompute of the fused affine (same math as the reference) --
    scale_c = weight.astype(jnp.float32) * jax.lax.rsqrt(
        running_var.astype(jnp.float32) + eps)                      # (C,)
    fbias_c = (bias.astype(jnp.float32)
               - running_mean.astype(jnp.float32) * scale_c)        # (C,)

    # PyTorch promotes half-precision x against float32 buffers.
    out_dtype = jnp.result_type(x.dtype, jnp.float32)
    in_size = jnp.dtype(x.dtype).itemsize
    out_size = jnp.dtype(out_dtype).itemsize
    # dtype-aware sublane alignment: f32 -> 8, bf16/f16 -> 16, int8/fp8 -> 32.
    row_align = {4: 8, 2: 16, 1: 32}.get(in_size, 8)

    # ~8 MiB per x block; 2 streams x 2 pipeline buffers stays < 48 MiB VMEM.
    target_elems = max(row_align * 128,
                       target_block_bytes // max(in_size, out_size))

    # ---- lane tile: prefer full rows (contiguous DMA, no lane over-padding) -
    if HW * row_align <= target_elems:
        TN = HW                                   # full extent: always legal
    else:
        TN = max(128, (target_elems // row_align) // 128 * 128)

    # ---- row tile: multiple of sublane alignment, sized to the byte target --
    if NC <= row_align:
        TM = NC                                   # full extent: always legal
    else:
        TM = min(_round_up(NC, row_align), max(1, target_elems // TN))
        TM = max(row_align, TM // row_align * row_align)

    grid_m, grid_n = pl.cdiv(NC, TM), pl.cdiv(HW, TN)
    # Single-step grid: split rows so v7x's 2 TensorCores both get work.
    # (No padding introduced — the extra edge block is just write-masked.)
    if grid_m * grid_n == 1 and NC > row_align:
        TM = max(row_align, _round_up(pl.cdiv(NC, 2), row_align))
        grid_m = pl.cdiv(NC, TM)

    x2 = x.reshape(NC, HW)                        # free row-major reshape

    # Fused per-row parameters: (NC, 2) with col 0 = scale, col 1 = bias.
    params = jnp.tile(jnp.stack([scale_c, fbias_c], axis=1), (N, 1))

    x_spec = pl.BlockSpec((TM, TN), lambda i, j: (i, j))
    p_spec = pl.BlockSpec((TM, 2), lambda i, j: (i, 0))

    cost = pl.CostEstimate(
        flops=2 * NC * HW,
        transcendentals=0,
        bytes_accessed=NC * HW * (in_size + out_size) + NC * 2 * 4,
    )

    out = pl.pallas_call(
        _fbn_kernel,
        out_shape=jax.ShapeDtypeStruct((NC, HW), out_dtype),
        grid_spec=pltpu.PrefetchScalarGridSpec(
            num_scalar_prefetch=0,
            grid=(grid_m, grid_n),
            in_specs=[x_spec, p_spec],
            out_specs=x_spec,
        ),
        compiler_params=pltpu.CompilerParams(
            dimension_semantics=("parallel", "parallel"),
            vmem_limit_bytes=48 << 20,   # safe on v7x (64 MiB/TC) and older
        ),
        cost_estimate=cost,
    )(x2, params)

    return out.reshape(N, C, H, W)


def frozen_batch_norm_2d_ref(x, weight, bias, running_mean, running_var):
    """Pure-JAX reference mirroring the PyTorch forward exactly."""
    w = weight.reshape(1, -1, 1, 1)
    b = bias.reshape(1, -1, 1, 1)
    rv = running_var.reshape(1, -1, 1, 1)
    rm = running_mean.reshape(1, -1, 1, 1)
    eps = 1e-05
    scale = w * jax.lax.rsqrt(rv + eps)
    bias_ = b - rm * scale
    return x * scale + bias_


if __name__ == "__main__":
    key = jax.random.PRNGKey(0)
    k_x, k_w, k_b, k_rm, k_rv, k_x2 = jax.random.split(key, 6)

    # Main test shape (lane-friendly spatial dims).
    N, C, H, W = 2, 4, 16, 16
    x = jax.random.normal(k_x, (N, C, H, W), dtype=jnp.float32)

    weight = jnp.ones((C,), jnp.float32) + 0.1 * jax.random.normal(k_w, (C,))
    bias = jnp.zeros((C,), jnp.float32) + 0.1 * jax.random.normal(k_b, (C,))
    running_mean = 0.05 * jax.random.normal(k_rm, (C,))
    running_var = jnp.ones((C,), jnp.float32) + 0.1 * jnp.abs(
        jax.random.normal(k_rv, (C,)))

    out = frozen_batch_norm_2d(x, weight, bias, running_mean, running_var)
    out = jax.block_until_ready(out)
    ref = frozen_batch_norm_2d_ref(x, weight, bias, running_mean, running_var)
    assert out.shape == (N, C, H, W)
    assert out.dtype == ref.dtype
    assert jnp.allclose(out, ref, atol=1e-5, rtol=1e-5), "mismatch (16x16)"

    # ResNet-style ragged shape (7x7=49 lanes, 12 rows) exercises the
    # pad-free cdiv grid with masked edge blocks.
    N2, C2, H2, W2 = 2, 6, 7, 7
    x_b = jax.random.normal(k_x2, (N2, C2, H2, W2), dtype=jnp.float32)
    w_b = jnp.ones((C2,), jnp.float32)
    b_b = 0.1 * jnp.arange(C2, dtype=jnp.float32)
    rm_b = 0.05 * jnp.ones((C2,), jnp.float32)
    rv_b = jnp.linspace(0.5, 1.5, C2, dtype=jnp.float32)

    out_b = frozen_batch_norm_2d(x_b, w_b, b_b, rm_b, rv_b)
    out_b = jax.block_until_ready(out_b)
    ref_b = frozen_batch_norm_2d_ref(x_b, w_b, b_b, rm_b, rv_b)
    assert out_b.shape == (N2, C2, H2, W2)
    assert jnp.allclose(out_b, ref_b, atol=1e-5, rtol=1e-5), "mismatch (7x7)"

    print("KERNEL_OK")
</pallas_src>

<mosaic_0001>
module attributes {stable_mosaic.version = 11 : i64} {
  func.func @_fbn_kernel(%arg0: i32, %arg1: i32, %arg2: memref<8x256xf32, #tpu.memory_space<vmem>>, %arg3: memref<8x2xf32, #tpu.memory_space<vmem>>, %arg4: memref<8x256xf32, #tpu.memory_space<vmem>>) attributes {dimension_semantics = [#tpu.dimension_semantics<parallel>, #tpu.dimension_semantics<parallel>], iteration_bounds = array<i64: 1, 1>, scalar_prefetch = 0 : i64, scratch_operands = 0 : i64, tpu.core_type = #tpu.core_type<tc>, window_params = [{transform_indices = @transform_0, window_bounds = array<i64: 8, 256>}, {transform_indices = @transform_1, window_bounds = array<i64: 8, 2>}, {transform_indices = @transform_2, window_bounds = array<i64: 8, 256>}]} {
    %c0 = arith.constant 0 : index
    %c0_0 = arith.constant 0 : index
    %0 = vector.load %arg2[%c0, %c0_0] : memref<8x256xf32, #tpu.memory_space<vmem>>, vector<8x256xf32>
    %c0_1 = arith.constant 0 : index
    %c0_2 = arith.constant 0 : index
    %1 = vector.load %arg3[%c0_1, %c0_2] : memref<8x2xf32, #tpu.memory_space<vmem>>, vector<8x2xf32>
    %2 = vector.extract_strided_slice %1 {offsets = [0, 0], sizes = [8, 1], strides = [1, 1]} : vector<8x2xf32> to vector<8x1xf32>
    %3 = vector.extract_strided_slice %1 {offsets = [0, 1], sizes = [8, 1], strides = [1, 1]} : vector<8x2xf32> to vector<8x1xf32>
    %4 = vector.broadcast %2 : vector<8x1xf32> to vector<8x256xf32>
    %5 = arith.mulf %0, %4 : vector<8x256xf32>
    %6 = vector.broadcast %3 : vector<8x1xf32> to vector<8x256xf32>
    %7 = arith.addf %5, %6 : vector<8x256xf32>
    %c0_3 = arith.constant 0 : index
    %c0_4 = arith.constant 0 : index
    %8 = vector.load %arg4[%c0_3, %c0_4] : memref<8x256xf32, #tpu.memory_space<vmem>>, vector<8x256xf32>
    tpu.vector_store %arg4[%c0_3, %c0_4], %7 {strides = array<i32>} : memref<8x256xf32, #tpu.memory_space<vmem>>, vector<8x256xf32>,
    return
  }
  func.func @transform_0(%arg0: i32, %arg1: i32) -> (i32, i32) {
    %c0_i32 = arith.constant 0 : i32
    return %arg0, %arg1 : i32, i32
  }
  func.func @transform_1(%arg0: i32, %arg1: i32) -> (i32, i32) {
    %c0_i32 = arith.constant 0 : i32
    %c0_i32_0 = arith.constant 0 : i32
    return %arg0, %c0_i32 : i32, i32
  }
  func.func @transform_2(%arg0: i32, %arg1: i32) -> (i32, i32) {
    %c0_i32 = arith.constant 0 : i32
    return %arg0, %arg1 : i32, i32
  }
}

</mosaic_0001>

<bundles_post_ra>
// kernel: tpu_custom_call.1
= control target key start
LH: loop header
LB: loop body
LE: loop exit
PB: predicated region body
PF: predicated region fallthrough
CT: control target
= control target key end

     0   :  { %7 = vsyncpa [#allocation3], 0  ;;  %s135_s0 = inlined_call_operand.hbm [shape: f32[8,256], index: 0, kind: input, shape index: {}]   ;;  %s136_s1 = inlined_call_operand.vmem [shape: f32[8,2], index: 1, kind: input, shape index: {}]   ;;  %s137_s2 = inlined_call_operand.hbm [shape: f32[8,256], index: 2, kind: output, shape index: {}]  }
   0x1   :  { %8 = vsyncpa [#allocation4], 0  ;;  %s107_s9 = smov [#allocation2]  }
   0x2   :  { %s15_s10 = sshll.u32 %s107_s9, 4  ;;  %s16_s10 = int_to_ptr.vmem [resolvable:$true] %s15_s10 }
   0x3   :  { %s71_s11 = scalar_lea.vmem %s16_s10, 256  ;;  %p76_p1 = scmp.lt.s32.totalorder %s16_s10, %s16_s10 }
   0x4   :  { %p72_p0 = scmp.ne.s32.totalorder %s16_s10, %s71_s11  ;;  %p77_p2 = scmp.lt.s32.totalorder %s71_s11, %s71_s11 }
   0x6   :  { %p78_p3 = por %p77_p2, %p76_p1 }
   0x8   :  { %p79_p4 = pnand %p78_p3, %p72_p0 }
   0xa   :  { %82 = shalt.err (!%p79_p4)
}
   0xb   :  { %18 = dma.hbm_to_vmem [thread:$0]  %s135_s0, 256, %s16_s10, [#allocation3]  }
   0xc   :  { %103 = dma.done.wait [#allocation3], 256  }
   0xd   :  { %104 = vsyncadd [#allocation3], 4294967040  ;;  %v108_v0 = vmov 0   ;;  %v26_v1 = vld [vmem:[%s136_s1] sm:$0xff]  ;;  %v109_v2 = vmov 1   ;;  %v25_v5 = vld [vmem:[#allocation2 + $0x8] sm:$0xff] }
   0xe   :  { %61 = vset.pattern.permute.xlu0 %v108_v0  ;;  %v24_v4 = vld [vmem:[#allocation2] sm:$0xff]  ;;  %s110_s16 = smov [#allocation5]  }
   0xf   :  { %29 = vperm.xlu0 %61, %v26_v1   ;;  %s48_s17 = sshll.u32 %s110_s16, 4  ;;  %s49_s17 = int_to_ptr.vmem [resolvable:$true] %s48_s17 }
  0x10   :  { %s83_s0 = scalar_lea.vmem %s49_s17, 256  ;;  %p88_p6 = scmp.lt.s32.totalorder %s49_s17, %s49_s17 }
  0x11   :  { %p84_p5 = scmp.ne.s32.totalorder %s49_s17, %s83_s0  ;;  %p89_p7 = scmp.lt.s32.totalorder %s83_s0, %s83_s0 }
  0x13   :  { %62 = vset.pattern.permute.xlu0 %v109_v2  ;;  %p90_p8 = por %p89_p7, %p88_p6 }
  0x14   :  { %35 = vperm.xlu0 %62, %v26_v1  }
  0x15   :  { %p91_p9 = pnand %p90_p8, %p84_p5 }
  0x8a   :  { %v30_v3 = vpop.permute.xlu0 %29 }
  0x8b   :  { %v32_v6 = vmul.f32 %v30_v3, %v24_v4  ;;  %v33_v7 = vmul.f32 %v30_v3, %v25_v5 }
  0x8f   :  { %v36_v8 = vpop.permute.xlu0 %35 }
  0x90   :  { %v38_v9 = vadd.f32 %v36_v8, %v32_v6  ;;  %v39_v10 = vadd.f32 %v36_v8, %v33_v7 }
  0x92   :  { %40 = vst [vmem:[#allocation5] sm:$0xff] %v38_v9  ;;  %41 = vst [vmem:[#allocation5 + $0x8] sm:$0xff] %v39_v10 }
  0x93   :  { %94 = shalt.err (!%p91_p9)
}
  0x94   :  { %51 = dma.vmem_to_hbm [thread:$0]  %s49_s17, 256, %s137_s2, [#allocation4]  }
  0x95   :  { %105 = dma.done.wait [#allocation4], 256  }
  0x96   :  { %106 = vsyncadd [#allocation4], 4294967040 }
  0x97   :  { %55 = vsyncpa [#allocation3], 1 }
  0x98   :  { %56 = vsyncpa [#allocation4], 1 }

</bundles_post_ra>
